<compile_context>
chip_gen: v6e
topology: v6e:2x2x1
jax: 0.10.0
libtpu: 0.0.40
codegen_flags: <defaults>
</compile_context>

<pallas_src>
import jax
import jax.numpy as jnp
from jax import lax
from jax.experimental import pallas as pl
from jax.experimental.pallas import tpu as pltpu

BN_EPS = 1e-5
_SMALL_N = 512          # below this, one (N, N) block is fine on every chip
_TM = 256               # row tile for large graphs (multiple of 8)
_TK = 512               # adjacency contraction tile for large graphs (multiple of 128)
_VMEM_LIMIT = 48 * 1024 * 1024   # safe on v5e/v6e (128 MiB) and v7x (64 MiB per TC)


def _round_up(v, m):
    return (v + m - 1) // m * m


# ------------- kernel 1a (F_in <= H): acc += A@X ; out = acc @ W^T + b -------
def _agg_project_kernel(a_ref, x_ref, wt_ref, b_ref, o_ref, acc_ref):
    k = pl.program_id(1)

    @pl.when(k == 0)
    def _init():
        acc_ref[...] = jnp.zeros_like(acc_ref)

    acc_ref[...] += jnp.dot(a_ref[...], x_ref[...],
                            preferred_element_type=jnp.float32)

    @pl.when(k == pl.num_programs(1) - 1)
    def _finalize():
        o_ref[...] = (jnp.dot(acc_ref[...], wt_ref[...],
                              preferred_element_type=jnp.float32)
                      + b_ref[...])


# ------------- kernel 1b (F_in > H): acc += A@(XW^T) ; out = acc + b ---------
def _agg_kernel(a_ref, h_ref, b_ref, o_ref, acc_ref):
    k = pl.program_id(1)

    @pl.when(k == 0)
    def _init():
        acc_ref[...] = jnp.zeros_like(acc_ref)

    acc_ref[...] += jnp.dot(a_ref[...], h_ref[...],
                            preferred_element_type=jnp.float32)

    @pl.when(k == pl.num_programs(1) - 1)
    def _finalize():
        o_ref[...] = acc_ref[...] + b_ref[...]


# ------------- kernel 2: folded BatchNorm (scale/shift) + ReLU ---------------
def _scale_shift_relu_kernel(y_ref, s_ref, t_ref, o_ref):
    o_ref[...] = jnp.maximum(y_ref[...] * s_ref[...] + t_ref[...], 0.0)


def gcn_feature_extractor(x, edge_index, params):
    """Forward pass of GCNFeatureExtractor.

    x:          [N, F_in] float32 node features
    edge_index: [2, E] int32 (source row, target col)
    params:     dict with W [H, F_in], b [H], gamma [H], beta [H]
    """
    N, F_in = x.shape
    W, b, gamma, beta = params["W"], params["b"], params["gamma"], params["beta"]
    H = W.shape[0]

    # --- glue: PyG gcn_norm as a dense matrix (add self loops, D^-1/2 sym) ---
    # TODO(synk): for genuinely sparse graphs, replace this dense [N, N] matrix
    # with CSR offsets + PrefetchScalarGridSpec gather (O(E*H) HBM traffic).
    row, col = edge_index[0], edge_index[1]
    a = jnp.zeros((N, N), jnp.float32).at[row, col].add(1.0)
    a_hat = a + jnp.eye(N, dtype=jnp.float32)
    deg = a_hat.sum(axis=0)
    dinv = lax.rsqrt(deg)
    a_norm = (dinv[:, None] * a_hat) * dinv[None, :]

    # --- tiling --------------------------------------------------------------
    if N <= _SMALL_N:
        Np, tm, tk = N, N, N
    else:
        tm, tk = _TM, _TK
        Np = _round_up(N, max(tm, tk))

    x_f32 = x.astype(jnp.float32)
    if Np != N:
        a_norm = jnp.pad(a_norm, ((0, Np - N), (0, Np - N)))
        x_f32 = jnp.pad(x_f32, ((0, Np - N), (0, 0)))

    b2 = b.reshape(1, H).astype(jnp.float32)

    grid = (Np // tm, Np // tk)
    a_spec = pl.BlockSpec((tm, tk), lambda i, k: (i, k))
    out_spec = pl.BlockSpec((tm, H), lambda i, k: (i, 0))
    bias_spec = pl.BlockSpec((1, H), lambda i, k: (0, 0))
    cparams = pltpu.CompilerParams(
        dimension_semantics=("parallel", "arbitrary"),
        vmem_limit_bytes=_VMEM_LIMIT)

    if F_in <= H:
        # (A @ X) @ W^T : the N^2 term contracts over the narrow F_in axis.
        wt = W.T.astype(jnp.float32)                              # [F_in, H]
        agg = pl.pallas_call(
            _agg_project_kernel,
            out_shape=jax.ShapeDtypeStruct((Np, H), jnp.float32),
            grid_spec=pltpu.PrefetchScalarGridSpec(
                num_scalar_prefetch=0,
                grid=grid,
                in_specs=[
                    a_spec,
                    pl.BlockSpec((tk, F_in), lambda i, k: (k, 0)),
                    pl.BlockSpec((F_in, H), lambda i, k: (0, 0)),   # W^T: DMAed once
                    bias_spec,
                ],
                out_specs=out_spec,
                scratch_shapes=[pltpu.VMEM((tm, F_in), jnp.float32)]),
            compiler_params=cparams,
        )(a_norm, x_f32, wt, b2)
    else:
        # Wide features: precompute H = X @ W^T once (not the dominant term)
        # and stream only [tk, H] tiles of it per contraction block.
        h = jnp.dot(x_f32, W.T.astype(jnp.float32),
                    preferred_element_type=jnp.float32)
        agg = pl.pallas_call(
            _agg_kernel,
            out_shape=jax.ShapeDtypeStruct((Np, H), jnp.float32),
            grid_spec=pltpu.PrefetchScalarGridSpec(
                num_scalar_prefetch=0,
                grid=grid,
                in_specs=[
                    a_spec,
                    pl.BlockSpec((tk, H), lambda i, k: (k, 0)),
                    bias_spec,
                ],
                out_specs=out_spec,
                scratch_shapes=[pltpu.VMEM((tm, H), jnp.float32)]),
            compiler_params=cparams,
        )(a_norm, h, b2)

    # --- BatchNorm1d (training-mode batch stats) folded into scale/shift -----
    # TODO(synk): eval-mode running_mean/running_var is not modeled (forward as
    # written uses batch statistics; N == 1 skips BN like the PyTorch code).
    if N > 1:
        valid = agg[:N]
        mean = jnp.mean(valid, axis=0, keepdims=True)
        var = jnp.mean(jnp.square(valid - mean), axis=0, keepdims=True)
        scale = gamma.reshape(1, H).astype(jnp.float32) * lax.rsqrt(var + BN_EPS)
        shift = beta.reshape(1, H).astype(jnp.float32) - mean * scale
    else:
        scale = jnp.ones((1, H), jnp.float32)
        shift = jnp.zeros((1, H), jnp.float32)

    out = pl.pallas_call(
        _scale_shift_relu_kernel,
        out_shape=jax.ShapeDtypeStruct((Np, H), jnp.float32),
        grid_spec=pltpu.PrefetchScalarGridSpec(
            num_scalar_prefetch=0,
            grid=(Np // tm,),
            in_specs=[
                pl.BlockSpec((tm, H), lambda i: (i, 0)),
                pl.BlockSpec((1, H), lambda i: (0, 0)),
                pl.BlockSpec((1, H), lambda i: (0, 0)),
            ],
            out_specs=pl.BlockSpec((tm, H), lambda i: (i, 0))),
        compiler_params=pltpu.CompilerParams(
            dimension_semantics=("parallel",),
            vmem_limit_bytes=_VMEM_LIMIT),
    )(agg, scale, shift)

    return out[:N] if Np != N else out


def _reference(x, edge_index, params):
    """Pure-JAX f32 reference mirroring GCNConv + BatchNorm1d(train) + ReLU."""
    N, F_in = x.shape
    W, b, gamma, beta = params["W"], params["b"], params["gamma"], params["beta"]
    row, col = edge_index[0], edge_index[1]
    a = jnp.zeros((N, N), jnp.float32).at[row, col].add(1.0)
    a_hat = a + jnp.eye(N, dtype=jnp.float32)
    deg = a_hat.sum(axis=0)
    dinv = lax.rsqrt(deg)
    a_norm = (dinv[:, None] * a_hat) * dinv[None, :]

    h = jnp.dot(x.astype(jnp.float32), W.T.astype(jnp.float32),
                preferred_element_type=jnp.float32)
    agg = jnp.dot(a_norm, h, preferred_element_type=jnp.float32) + b[None, :]

    if N > 1:
        mean = jnp.mean(agg, axis=0, keepdims=True)
        var = jnp.mean(jnp.square(agg - mean), axis=0, keepdims=True)
        scale = gamma[None, :] * lax.rsqrt(var + BN_EPS)
        shift = beta[None, :] - mean * scale
        agg = agg * scale + shift
    return jnp.maximum(agg, 0.0)


if __name__ == "__main__":
    N, F_in, hidden = 16, 8, 128

    key = jax.random.PRNGKey(0)
    k_x, k_g, k_w, k_b, k_gm, k_bt = jax.random.split(key, 6)

    # Node features
    x = jax.random.normal(k_x, (N, F_in), dtype=jnp.float32)

    # Deterministic random undirected graph -> edge_index [2, E]
    upper = jnp.triu(jax.random.bernoulli(k_g, 0.3, (N, N)), k=1)
    adj = jnp.logical_or(upper, upper.T)
    row_idx, col_idx = jnp.nonzero(adj)
    edge_index = jnp.stack([row_idx, col_idx]).astype(jnp.int32)

    # Deterministic parameters (GCNConv(input_dim, hidden) + BatchNorm1d(hidden))
    params = {
        "W": jax.random.normal(k_w, (hidden, F_in), dtype=jnp.float32) * 0.1,
        "b": jax.random.normal(k_b, (hidden,), dtype=jnp.float32) * 0.1,
        "gamma": 1.0 + 0.1 * jax.random.normal(k_gm, (hidden,), dtype=jnp.float32),
        "beta": 0.1 * jax.random.normal(k_bt, (hidden,), dtype=jnp.float32),
    }

    out = jax.jit(gcn_feature_extractor)(x, edge_index, params)
    out = jax.block_until_ready(out)
    assert out.shape == (N, hidden)

    ref = _reference(x, edge_index, params)
    assert jnp.allclose(out, ref, atol=1e-3, rtol=1e-3), "kernel mismatch"

    print("KERNEL_OK")
</pallas_src>

<mosaic_0001>
module attributes {stable_mosaic.version = 11 : i64} {
  func.func @_scale_shift_relu_kernel(%arg0: i32, %arg1: memref<16x128xf32, #tpu.memory_space<vmem>>, %arg2: memref<1x128xf32, #tpu.memory_space<vmem>>, %arg3: memref<1x128xf32, #tpu.memory_space<vmem>>, %arg4: memref<16x128xf32, #tpu.memory_space<vmem>>) attributes {dimension_semantics = [#tpu.dimension_semantics<parallel>], iteration_bounds = array<i64: 1>, scalar_prefetch = 0 : i64, scratch_operands = 0 : i64, tpu.core_type = #tpu.core_type<tc>, window_params = [{transform_indices = @transform_0, window_bounds = array<i64: 16, 128>}, {pipeline_mode = #tpu.pipeline_mode<synchronous>, transform_indices = @transform_1, window_bounds = array<i64: 1, 128>}, {pipeline_mode = #tpu.pipeline_mode<synchronous>, transform_indices = @transform_2, window_bounds = array<i64: 1, 128>}, {transform_indices = @transform_3, window_bounds = array<i64: 16, 128>}]} {
    %c0 = arith.constant 0 : index
    %c0_0 = arith.constant 0 : index
    %0 = vector.load %arg1[%c0, %c0_0] : memref<16x128xf32, #tpu.memory_space<vmem>>, vector<16x128xf32>
    %c0_1 = arith.constant 0 : index
    %c0_2 = arith.constant 0 : index
    %1 = vector.load %arg2[%c0_1, %c0_2] : memref<1x128xf32, #tpu.memory_space<vmem>>, vector<1x128xf32>
    %2 = vector.broadcast %1 : vector<1x128xf32> to vector<16x128xf32>
    %3 = arith.mulf %0, %2 : vector<16x128xf32>
    %c0_3 = arith.constant 0 : index
    %c0_4 = arith.constant 0 : index
    %4 = vector.load %arg3[%c0_3, %c0_4] : memref<1x128xf32, #tpu.memory_space<vmem>>, vector<1x128xf32>
    %5 = vector.broadcast %4 : vector<1x128xf32> to vector<16x128xf32>
    %6 = arith.addf %3, %5 : vector<16x128xf32>
    %cst = arith.constant 0.000000e+00 : f32
    %7 = vector.broadcast %cst : f32 to vector<16x128xf32>
    %8 = arith.maximumf %6, %7 : vector<16x128xf32>
    %c0_5 = arith.constant 0 : index
    %c0_6 = arith.constant 0 : index
    %9 = vector.load %arg4[%c0_5, %c0_6] : memref<16x128xf32, #tpu.memory_space<vmem>>, vector<16x128xf32>
    tpu.vector_store %arg4[%c0_5, %c0_6], %8 {strides = array<i32>} : memref<16x128xf32, #tpu.memory_space<vmem>>, vector<16x128xf32>,
    return
  }
  func.func @transform_0(%arg0: i32) -> (i32, i32) {
    %c0_i32 = arith.constant 0 : i32
    %c0_i32_0 = arith.constant 0 : i32
    return %arg0, %c0_i32 : i32, i32
  }
  func.func @transform_1(%arg0: i32) -> (i32, i32) {
    %c0_i32 = arith.constant 0 : i32
    %c0_i32_0 = arith.constant 0 : i32
    %c0_i32_1 = arith.constant 0 : i32
    return %c0_i32, %c0_i32_0 : i32, i32
  }
  func.func @transform_2(%arg0: i32) -> (i32, i32) {
    %c0_i32 = arith.constant 0 : i32
    %c0_i32_0 = arith.constant 0 : i32
    %c0_i32_1 = arith.constant 0 : i32
    return %c0_i32, %c0_i32_0 : i32, i32
  }
  func.func @transform_3(%arg0: i32) -> (i32, i32) {
    %c0_i32 = arith.constant 0 : i32
    %c0_i32_0 = arith.constant 0 : i32
    return %arg0, %c0_i32 : i32, i32
  }
}

module attributes {stable_mosaic.version = 11 : i64} {
  func.func @_agg_project_kernel(%arg0: i32, %arg1: i32, %arg2: memref<16x16xf32, #tpu.memory_space<vmem>>, %arg3: memref<16x8xf32, #tpu.memory_space<vmem>>, %arg4: memref<8x128xf32, #tpu.memory_space<vmem>>, %arg5: memref<1x128xf32, #tpu.memory_space<vmem>>, %arg6: memref<16x128xf32, #tpu.memory_space<vmem>>, %arg7: memref<16x8xf32, #tpu.memory_space<vmem>>) attributes {dimension_semantics = [#tpu.dimension_semantics<parallel>, #tpu.dimension_semantics<arbitrary>], iteration_bounds = array<i64: 1, 1>, scalar_prefetch = 0 : i64, scratch_operands = 1 : i64, tpu.core_type = #tpu.core_type<tc>, window_params = [{transform_indices = @transform_0, window_bounds = array<i64: 16, 16>}, {transform_indices = @transform_1, window_bounds = array<i64: 16, 8>}, {pipeline_mode = #tpu.pipeline_mode<synchronous>, transform_indices = @transform_2, window_bounds = array<i64: 8, 128>}, {pipeline_mode = #tpu.pipeline_mode<synchronous>, transform_indices = @transform_3, window_bounds = array<i64: 1, 128>}, {transform_indices = @transform_4, window_bounds = array<i64: 16, 128>}]} {
    %c0_i32 = arith.constant 0 : i32
    %0 = arith.cmpi eq, %arg1, %c0_i32 : i32
    %1 = arith.extui %0 : i1 to i32
    %c0_i32_0 = arith.constant 0 : i32
    %2 = arith.cmpi ne, %1, %c0_i32_0 : i32
    scf.if %2 {
      %cst_10 = arith.constant 0.000000e+00 : f32
      %12 = vector.broadcast %cst_10 : f32 to vector<16x8xf32>
      %c0_11 = arith.constant 0 : index
      %c0_12 = arith.constant 0 : index
      %13 = vector.load %arg7[%c0_11, %c0_12] : memref<16x8xf32, #tpu.memory_space<vmem>>, vector<16x8xf32>
      tpu.vector_store %arg7[%c0_11, %c0_12], %12 {strides = array<i32>} : memref<16x8xf32, #tpu.memory_space<vmem>>, vector<16x8xf32>,
    } else {
    }
    %c0 = arith.constant 0 : index
    %c0_1 = arith.constant 0 : index
    %3 = vector.load %arg7[%c0, %c0_1] : memref<16x8xf32, #tpu.memory_space<vmem>>, vector<16x8xf32>
    %c0_2 = arith.constant 0 : index
    %c0_3 = arith.constant 0 : index
    %4 = vector.load %arg2[%c0_2, %c0_3] : memref<16x16xf32, #tpu.memory_space<vmem>>, vector<16x16xf32>
    %c0_4 = arith.constant 0 : index
    %c0_5 = arith.constant 0 : index
    %5 = vector.load %arg3[%c0_4, %c0_5] : memref<16x8xf32, #tpu.memory_space<vmem>>, vector<16x8xf32>
    %cst = arith.constant dense<0.000000e+00> : vector<16x8xf32>
    %6 = tpu.matmul %4, %5, %cst {dimension_numbers = #tpu.dot_dimension_numbers<[1], [0], [0], [1], [0, 0, 1, 1], [], []>} : vector<16x16xf32>, vector<16x8xf32>, vector<16x8xf32> -> vector<16x8xf32>
    %7 = arith.addf %3, %6 : vector<16x8xf32>
    %c0_6 = arith.constant 0 : index
    %c0_7 = arith.constant 0 : index
    %8 = vector.load %arg7[%c0_6, %c0_7] : memref<16x8xf32, #tpu.memory_space<vmem>>, vector<16x8xf32>
    tpu.vector_store %arg7[%c0_6, %c0_7], %7 {strides = array<i32>} : memref<16x8xf32, #tpu.memory_space<vmem>>, vector<16x8xf32>,
    %c0_i32_8 = arith.constant 0 : i32
    %9 = arith.cmpi eq, %arg1, %c0_i32_8 : i32
    %10 = arith.extui %9 : i1 to i32
    %c0_i32_9 = arith.constant 0 : i32
    %11 = arith.cmpi ne, %10, %c0_i32_9 : i32
    scf.if %11 {
      %c0_10 = arith.constant 0 : index
      %c0_11 = arith.constant 0 : index
      %12 = vector.load %arg7[%c0_10, %c0_11] : memref<16x8xf32, #tpu.memory_space<vmem>>, vector<16x8xf32>
      %c0_12 = arith.constant 0 : index
      %c0_13 = arith.constant 0 : index
      %13 = vector.load %arg4[%c0_12, %c0_13] : memref<8x128xf32, #tpu.memory_space<vmem>>, vector<8x128xf32>
      %cst_14 = arith.constant dense<0.000000e+00> : vector<16x128xf32>
      %14 = tpu.matmul %12, %13, %cst_14 {dimension_numbers = #tpu.dot_dimension_numbers<[1], [0], [0], [1], [0, 0, 1, 1], [], []>} : vector<16x8xf32>, vector<8x128xf32>, vector<16x128xf32> -> vector<16x128xf32>
      %c0_15 = arith.constant 0 : index
      %c0_16 = arith.constant 0 : index
      %15 = vector.load %arg5[%c0_15, %c0_16] : memref<1x128xf32, #tpu.memory_space<vmem>>, vector<1x128xf32>
      %16 = vector.broadcast %15 : vector<1x128xf32> to vector<16x128xf32>
      %17 = arith.addf %14, %16 : vector<16x128xf32>
      %c0_17 = arith.constant 0 : index
      %c0_18 = arith.constant 0 : index
      %18 = vector.load %arg6[%c0_17, %c0_18] : memref<16x128xf32, #tpu.memory_space<vmem>>, vector<16x128xf32>
      tpu.vector_store %arg6[%c0_17, %c0_18], %17 {strides = array<i32>} : memref<16x128xf32, #tpu.memory_space<vmem>>, vector<16x128xf32>,
    } else {
    }
    return
  }
  func.func @transform_0(%arg0: i32, %arg1: i32) -> (i32, i32) {
    %c0_i32 = arith.constant 0 : i32
    return %arg0, %arg1 : i32, i32
  }
  func.func @transform_1(%arg0: i32, %arg1: i32) -> (i32, i32) {
    %c0_i32 = arith.constant 0 : i32
    %c0_i32_0 = arith.constant 0 : i32
    return %arg1, %c0_i32 : i32, i32
  }
  func.func @transform_2(%arg0: i32, %arg1: i32) -> (i32, i32) {
    %c0_i32 = arith.constant 0 : i32
    %c0_i32_0 = arith.constant 0 : i32
    %c0_i32_1 = arith.constant 0 : i32
    return %c0_i32, %c0_i32_0 : i32, i32
  }
  func.func @transform_3(%arg0: i32, %arg1: i32) -> (i32, i32) {
    %c0_i32 = arith.constant 0 : i32
    %c0_i32_0 = arith.constant 0 : i32
    %c0_i32_1 = arith.constant 0 : i32
    return %c0_i32, %c0_i32_0 : i32, i32
  }
  func.func @transform_4(%arg0: i32, %arg1: i32) -> (i32, i32) {
    %c0_i32 = arith.constant 0 : i32
    %c0_i32_0 = arith.constant 0 : i32
    return %arg0, %c0_i32 : i32, i32
  }
}

</mosaic_0001>

<bundles_post_ra>
// kernel: gcn_feature_extractor.3
= control target key start
LH: loop header
LB: loop body
LE: loop exit
PB: predicated region body
PF: predicated region fallthrough
CT: control target
= control target key end

     0   :  { %s120_s0 = inlined_call_operand.vmem [shape: f32[16,128], index: 0, kind: input, shape index: {}]   ;;  %s121_s1 = inlined_call_operand.vmem [shape: f32[1,128], index: 1, kind: input, shape index: {}]   ;;  %s122_s2 = inlined_call_operand.vmem [shape: f32[1,128], index: 2, kind: input, shape index: {}]   ;;  %s123_s3 = inlined_call_operand.hbm [shape: f32[16,128], index: 3, kind: output, shape index: {}]  }
   0x1   :  { %v15_v0 = vld [vmem:[%s120_s0] sm:$0xff]  ;;  %v16_v4 = vld [vmem:[%s120_s0 + $0x8] sm:$0xff] }
   0x2   :  { %v55_v1 = vld [vmem:[%s121_s1] ss:$0 sm:$0xff] }
   0x3   :  { %v56_v2 = vld [vmem:[%s122_s2] ss:$0 sm:$0xff]  ;;  %v24_v3 = vmul.f32 %v55_v1, %v15_v0 }
   0x4   :  { %8 = vsyncpa [#allocation3], 0  ;;  %v25_v5 = vmul.f32 %v55_v1, %v16_v4  ;;  %s82_s20 = smov [#allocation2]  }
   0x5   :  { %v33_v6 = vadd.f32 %v56_v2, %v24_v3  ;;  %s44_s21 = sshll.u32 %s82_s20, 4  ;;  %s45_s21 = int_to_ptr.vmem [resolvable:$true] %s44_s21 }
   0x6   :  { %v34_v7 = vadd.f32 %v56_v2, %v25_v5  ;;  %s60_s1 = scalar_lea.vmem %s45_s21, 256  ;;  %p65_p1 = scmp.lt.s32.totalorder %s45_s21, %s45_s21 }
   0x7   :  { %v35_v8 = vmax.f32 %v33_v6, 0.0  ;;  %p61_p0 = scmp.ne.s32.totalorder %s45_s21, %s60_s1  ;;  %p66_p2 = scmp.lt.s32.totalorder %s60_s1, %s60_s1 }
   0x8   :  { %v36_v9 = vmax.f32 %v34_v7, 0.0 }
   0x9   :  { %37 = vst [vmem:[#allocation2] sm:$0xff] %v35_v8  ;;  %p67_p3 = por %p66_p2, %p65_p1 }
   0xa   :  { %38 = vst [vmem:[#allocation2 + $0x8] sm:$0xff] %v36_v9 }
   0xb   :  { %p68_p4 = pnand %p67_p3, %p61_p0 }
   0xd   :  { %71 = shalt.err (!%p68_p4)
}
   0xe   :  { %s83_s2 = smov 128   ;;  %s84_s0 = smov 8  }
   0xf   :  { %50 = dma.vmem_to_hbm [thread:$0]  %s45_s21, 256, %s123_s3, [#allocation3], %s83_s2, %s83_s2, %s84_s0  }
  0x10   :  { %80 = dma.done.wait [#allocation3], 256  }
  0x11   :  { %81 = vsyncadd [#allocation3], 4294967040 }
  0x12   :  { %54 = vsyncpa [#allocation3], 1 }

// kernel: gcn_feature_extractor.2
= control target key start
LH: loop header
LB: loop body
LE: loop exit
PB: predicated region body
PF: predicated region fallthrough
CT: control target
= control target key end

     0   :  { %vm30_vm0 = vcmask 130048   ;;  %vm21_vm1 = vcmask 64512   ;;  %v242_v3 = vmov 0.0   ;;  %s298_s1 = inlined_call_operand.vmem [shape: f32[16,8], index: 1, kind: input, shape index: {}]   ;;  %s299_s0 = inlined_call_operand.vmem [shape: f32[16,16], index: 0, kind: input, shape index: {}]   ;;  %s300_s2 = inlined_call_operand.vmem [shape: f32[8,128], index: 2, kind: input, shape index: {}]   ;;  %s301_s3 = inlined_call_operand.vmem [shape: f32[1,128], index: 3, kind: input, shape index: {}]   ;;  %s302_s4 = inlined_call_operand.vmem [shape: f32[16,128], index: 4, kind: output, shape index: {}]  }
   0x1   :  { %v29_v0 = vld [vmem:[%s298_s1 + $0x8] sm:$0xff]  ;;  %v28_v1 = vld [vmem:[%s298_s1] sm:$0xff]  ;;  %23 = vst.msk [vmem:[#allocation2 + $0x8] sm:$0xff] %vm21_vm1, %v242_v3  ;;  %22 = vst.msk [vmem:[#allocation2] sm:$0xff] %vm21_vm1, %v242_v3 }
   0x2   :  { %v26_v2 = vld [vmem:[%s299_s0] sm:$0xff]  ;;  %229 = vmatprep.subr.mxu0 %v29_v0  ;;  %v27_v4 = vld [vmem:[%s299_s0 + $0x8] sm:$0xff] }
   0x3   :  { %233 = vmatprep.mubr.msk.f32.mxu0 %vm30_vm0, %v26_v2  ;;  %230 = vmatpush3.msra.mxu0 %v29_v0  ;;  %v122_v5 = vld [vmem:[%s300_s2] sm:$0xff] }
   0x4   :  { %231 = vmatprep.subr.mxu0 %v28_v1  ;;  %236 = vmatprep.subr.mxu1 %v122_v5  ;;  %v219_v14 = vld [vmem:[%s301_s3] ss:$0 sm:$0xff] }
   0x5   :  { %232 = vmatpush3.msra.mxu0 %v28_v1  ;;  %237 = vmatpush3.msra.mxu1 %v122_v5 }
   0x6   :  { %234 = vmatmul.mubr.msk.f32.vlgmr.msra.gmra.mxu0 %vm30_vm0, %v27_v4 }
   0x8   :  { %v25_v6 = vld [vmem:[#allocation2 + $0x8] sm:$0xff]  ;;  %v24_v8 = vld [vmem:[#allocation2] sm:$0xff] }
  0xc6   :  { %v235_v7 = vpop.f32.mrf.mxu0 }
  0xc7   :  { %v113_v9 = vadd.f32 %v235_v7, %v25_v6 }
  0xc8   :  { %v103_v10 = vpop.f32.mrf.mxu0 }
  0xc9   :  { %116 = vst.msk [vmem:[#allocation2 + $0x8] sm:$0xff] %vm21_vm1, %v113_v9  ;;  %v112_v11 = vadd.f32 %v103_v10, %v24_v8 }
  0xcb   :  { %115 = vst.msk [vmem:[#allocation2] sm:$0xff] %vm21_vm1, %v112_v11 }
  0xd0   :  { %v121_v13 = vld [vmem:[#allocation2 + $0x8] sm:$0xff] }
  0xd2   :  { %v120_v12 = vld [vmem:[#allocation2] sm:$0xff] }
  0xd3   :  { %238 = vmatprep.mubr.msk.f32.mxu1 %vm21_vm1, %v120_v12 }
  0xd4   :  { %239 = vmatmul.mubr.msk.f32.vlgmr.msra.gmra.mxu1 %vm21_vm1, %v121_v13 }
 0x194   :  { %v240_v15 = vpop.f32.mrf.mxu1 }
 0x195   :  { %v208_v16 = vadd.f32 %v240_v15, %v219_v14 }
 0x196   :  { %v202_v17 = vpop.f32.mrf.mxu1 }
 0x197   :  { %212 = vst [vmem:[%s302_s4 + $0x8] sm:$0xff] %v208_v16  ;;  %v203_v18 = vadd.f32 %v219_v14, %v202_v17 }
 0x199   :  { %211 = vst [vmem:[%s302_s4] sm:$0xff] %v203_v18 }

</bundles_post_ra>
